<compile_context>
chip_gen: v6e
topology: v6e:2x2x1
jax: 0.10.0
libtpu: 0.0.40
codegen_flags: <defaults>
</compile_context>

<pallas_src>
import functools

import jax
import jax.numpy as jnp
from jax.experimental import pallas as pl
from jax.experimental.pallas import tpu as pltpu


def _round_up(x, m):
    return (x + m - 1) // m * m


def _matmul_bias_kernel(x_ref, w_ref, b_ref, o_ref):
    # out = x @ W_eff + b   (W_eff = Wq + Wp, folded in the wrapper)
    acc = jnp.dot(x_ref[...], w_ref[...], preferred_element_type=jnp.float32)
    o_ref[...] = (acc + b_ref[...]).astype(o_ref.dtype)


def _matmul_bias_skip_kernel(x_ref, w_ref, b_ref, xid_ref, o_ref):
    # out = x @ Wq + b + x   (identity skip; in_features == out_features)
    acc = jnp.dot(x_ref[...], w_ref[...], preferred_element_type=jnp.float32)
    acc = acc + b_ref[...] + xid_ref[...].astype(jnp.float32)
    o_ref[...] = acc.astype(o_ref.dtype)


def _pick_tiles(batch, f_out_pad):
    # M tile: fill the MXU / amortize per-grid-step overhead, multiples of 8.
    if batch >= 512:
        tm = 256
    else:
        tm = _round_up(min(batch, 256), 8)
    # N tile: lane-dense multiple of 128 (256/512 match the wide MXUs).
    tn = 128
    for cand in (512, 256, 128):
        if f_out_pad % cand == 0:
            tn = cand
            break
    return tm, tn


@jax.jit
def quasi_skip(x, wq_t, bq, wp_t=None):
    """QuasiSkip forward.

    x     : [B, in_features] or [in_features]
    wq_t  : [in_features, out_features]   (Quasi weight, transposed)
    bq    : [out_features]                (Quasi bias)
    wp_t  : [in_features, out_features]   (projection weight, transposed) or None
    Returns [B, out_features]  (1-D input -> [1, out_features], matching the
    PyTorch module's unsqueeze-then-broadcast behaviour).
    """
    if x.ndim == 1:
        x = x[None, :]
    B, f_in = x.shape
    f_out = wq_t.shape[1]
    need_projection = wp_t is not None

    # Fold projection into the Quasi matmul (outside the kernel, done once).
    w_eff = wq_t + wp_t if need_projection else wq_t

    # Lane-dense padding of the output; in the square (identity-skip) case pad
    # the input feature axis identically so identity tiles line up with N tiles.
    f_out_pad = _round_up(f_out, 128)
    f_in_pad = f_in if need_projection else f_out_pad

    tm, tn = _pick_tiles(B, f_out_pad)
    B_pad = _round_up(B, tm)

    xp = x
    if B_pad != B or f_in_pad != f_in:
        xp = jnp.pad(x, ((0, B_pad - B), (0, f_in_pad - f_in)))
    wpd = w_eff
    if f_in_pad != f_in or f_out_pad != f_out:
        wpd = jnp.pad(w_eff, ((0, f_in_pad - f_in), (0, f_out_pad - f_out)))
    bpd = bq if f_out_pad == f_out else jnp.pad(bq, (0, f_out_pad - f_out))
    bpd = bpd.reshape(1, f_out_pad)

    grid = (B_pad // tm, f_out_pad // tn)

    x_spec = pl.BlockSpec((tm, f_in_pad), lambda i, j: (i, 0))
    w_spec = pl.BlockSpec((f_in_pad, tn), lambda i, j: (0, j))
    b_spec = pl.BlockSpec((1, tn), lambda i, j: (0, j))
    o_spec = pl.BlockSpec((tm, tn), lambda i, j: (i, j))

    # VMEM budget: double-buffered f32 tiles, with headroom; cap at v7x's 64 MiB.
    vmem_need = 2 * 4 * (tm * f_in_pad + f_in_pad * tn + tn + tm * tn)
    if not need_projection:
        vmem_need += 2 * 4 * tm * tn  # extra identity-tile input
    vmem_limit = int(min(max(2 * vmem_need, 16 * 1024 * 1024), 64 * 1024 * 1024))

    if need_projection:
        kernel = _matmul_bias_kernel
        in_specs = [x_spec, w_spec, b_spec]
        args = (xp, wpd, bpd)
    else:
        kernel = _matmul_bias_skip_kernel
        xid_spec = pl.BlockSpec((tm, tn), lambda i, j: (i, j))
        in_specs = [x_spec, w_spec, b_spec, xid_spec]
        args = (xp, wpd, bpd, xp)

    out = pl.pallas_call(
        kernel,
        out_shape=jax.ShapeDtypeStruct((B_pad, f_out_pad), x.dtype),
        grid_spec=pltpu.PrefetchScalarGridSpec(
            num_scalar_prefetch=0,
            grid=grid,
            in_specs=in_specs,
            out_specs=o_spec,
        ),
        compiler_params=pltpu.CompilerParams(
            dimension_semantics=("parallel", "parallel"),
            vmem_limit_bytes=vmem_limit,
        ),
    )(*args)

    return out[:B, :f_out]


def init_quasi_skip_params(key, in_features, out_features, dtype=jnp.float32):
    """Deterministic synthetic parameter init (nn.Linear-style uniform)."""
    k_wq, k_bq, k_wp = jax.random.split(key, 3)
    bound = 1.0 / jnp.sqrt(in_features)
    # Quasi (stand-in): weight [out, in], bias [out]; stored transposed for the kernel.
    wq = jax.random.uniform(k_wq, (out_features, in_features), dtype, -bound, bound)
    bq = jax.random.uniform(k_bq, (out_features,), dtype, -bound, bound)
    params = {"wq_t": wq.T, "bq": bq}
    if in_features != out_features:
        wp = jax.random.uniform(k_wp, (out_features, in_features), dtype, -bound, bound)
        params["wp_t"] = wp.T
    return params


if __name__ == "__main__":
    batch = 8
    in_features = 32
    out_features = 64

    key = jax.random.PRNGKey(0)
    k_x, k_p = jax.random.split(key)
    x = jax.random.normal(k_x, (batch, in_features), jnp.float32)
    params = init_quasi_skip_params(k_p, in_features, out_features)

    # Projection path (in != out).
    out = quasi_skip(x, params["wq_t"], params["bq"], params.get("wp_t"))
    out = jax.block_until_ready(out)
    ref = x @ params["wq_t"] + params["bq"] + x @ params["wp_t"]
    assert out.shape == (batch, out_features)
    assert jnp.allclose(out, ref, atol=1e-5, rtol=1e-5)

    # Identity-skip path (in == out).
    params_sq = init_quasi_skip_params(k_p, in_features, in_features)
    out_sq = quasi_skip(x, params_sq["wq_t"], params_sq["bq"], None)
    out_sq = jax.block_until_ready(out_sq)
    ref_sq = x @ params_sq["wq_t"] + params_sq["bq"] + x
    assert out_sq.shape == (batch, in_features)
    assert jnp.allclose(out_sq, ref_sq, atol=1e-5, rtol=1e-5)

    # 1-D input path (matches the module's unsqueeze behaviour).
    out_1d = quasi_skip(x[0], params["wq_t"], params["bq"], params.get("wp_t"))
    out_1d = jax.block_until_ready(out_1d)
    assert out_1d.shape == (1, out_features)
    assert jnp.allclose(out_1d[0], ref[0], atol=1e-5, rtol=1e-5)

    print("KERNEL_OK")
</pallas_src>

<mosaic_0001>
module attributes {stable_mosaic.version = 11 : i64} {
  func.func @_matmul_bias_kernel(%arg0: i32, %arg1: i32, %arg2: memref<8x32xf32, #tpu.memory_space<vmem>>, %arg3: memref<32x128xf32, #tpu.memory_space<vmem>>, %arg4: memref<1x128xf32, #tpu.memory_space<vmem>>, %arg5: memref<8x128xf32, #tpu.memory_space<vmem>>) attributes {dimension_semantics = [#tpu.dimension_semantics<parallel>, #tpu.dimension_semantics<parallel>], iteration_bounds = array<i64: 1, 1>, scalar_prefetch = 0 : i64, scratch_operands = 0 : i64, tpu.core_type = #tpu.core_type<tc>, window_params = [{transform_indices = @transform_0, window_bounds = array<i64: 8, 32>}, {transform_indices = @transform_1, window_bounds = array<i64: 32, 128>}, {transform_indices = @transform_2, window_bounds = array<i64: 1, 128>}, {transform_indices = @transform_3, window_bounds = array<i64: 8, 128>}]} {
    %c0 = arith.constant 0 : index
    %c0_0 = arith.constant 0 : index
    %0 = vector.load %arg2[%c0, %c0_0] : memref<8x32xf32, #tpu.memory_space<vmem>>, vector<8x32xf32>
    %c0_1 = arith.constant 0 : index
    %c0_2 = arith.constant 0 : index
    %1 = vector.load %arg3[%c0_1, %c0_2] : memref<32x128xf32, #tpu.memory_space<vmem>>, vector<32x128xf32>
    %cst = arith.constant dense<0.000000e+00> : vector<8x128xf32>
    %2 = tpu.matmul %0, %1, %cst {dimension_numbers = #tpu.dot_dimension_numbers<[1], [0], [0], [1], [0, 0, 1, 1], [], []>} : vector<8x32xf32>, vector<32x128xf32>, vector<8x128xf32> -> vector<8x128xf32>
    %c0_3 = arith.constant 0 : index
    %c0_4 = arith.constant 0 : index
    %3 = vector.load %arg4[%c0_3, %c0_4] : memref<1x128xf32, #tpu.memory_space<vmem>>, vector<1x128xf32>
    %4 = vector.broadcast %3 : vector<1x128xf32> to vector<8x128xf32>
    %5 = arith.addf %2, %4 : vector<8x128xf32>
    %c0_5 = arith.constant 0 : index
    %c0_6 = arith.constant 0 : index
    %6 = vector.load %arg5[%c0_5, %c0_6] : memref<8x128xf32, #tpu.memory_space<vmem>>, vector<8x128xf32>
    tpu.vector_store %arg5[%c0_5, %c0_6], %5 {strides = array<i32>} : memref<8x128xf32, #tpu.memory_space<vmem>>, vector<8x128xf32>,
    return
  }
  func.func @transform_0(%arg0: i32, %arg1: i32) -> (i32, i32) {
    %c0_i32 = arith.constant 0 : i32
    %c0_i32_0 = arith.constant 0 : i32
    return %arg0, %c0_i32 : i32, i32
  }
  func.func @transform_1(%arg0: i32, %arg1: i32) -> (i32, i32) {
    %c0_i32 = arith.constant 0 : i32
    %c0_i32_0 = arith.constant 0 : i32
    return %c0_i32, %arg1 : i32, i32
  }
  func.func @transform_2(%arg0: i32, %arg1: i32) -> (i32, i32) {
    %c0_i32 = arith.constant 0 : i32
    %c0_i32_0 = arith.constant 0 : i32
    return %c0_i32, %arg1 : i32, i32
  }
  func.func @transform_3(%arg0: i32, %arg1: i32) -> (i32, i32) {
    %c0_i32 = arith.constant 0 : i32
    return %arg0, %arg1 : i32, i32
  }
}

</mosaic_0001>

<bundles_post_ra>
// kernel: quasi_skip.1
= control target key start
LH: loop header
LB: loop body
LE: loop exit
PB: predicated region body
PF: predicated region fallthrough
CT: control target
= control target key end

     0   :  { %v159_v1 = vmov 0.0   ;;  %vm160_vm0 = vmmov 0   ;;  %s203_s0 = inlined_call_operand.vmem [shape: f32[8,32], index: 0, kind: input, shape index: {}]   ;;  %s204_s1 = inlined_call_operand.vmem [shape: f32[32,128], index: 1, kind: input, shape index: {}]   ;;  %s205_s2 = inlined_call_operand.vmem [shape: f32[1,128], index: 2, kind: input, shape index: {}]   ;;  %s206_s3 = inlined_call_operand.hbm [shape: f32[8,128], index: 3, kind: output, shape index: {}]  }
   0x1   :  { %v19_v0 = vld [vmem:[%s204_s1 + $0x18] sm:$0xff]  ;;  %123 = vmatprep.subr.mxu0 %v159_v1  ;;  %v18_v2 = vld [vmem:[%s204_s1 + $0x10] sm:$0xff]  ;;  %131 = vmatprep.mubr.msk.f32.mxu0 %vm160_vm0, %v159_v1 }
   0x2   :  { %124 = vmatpush3.msra.mxu0 %v19_v0 }
   0x3   :  { %8 = vsyncpa [#allocation3], 0  ;;  %125 = vmatprep.subr.mxu0 %v159_v1  ;;  %v17_v3 = vld [vmem:[%s204_s1 + $0x8] sm:$0xff]  ;;  %v16_v4 = vld [vmem:[%s204_s1] sm:$0xff]  ;;  %vm27_vm1 = vcmask 261120   ;;  %s161_s24 = smov [#allocation2]  }
   0x4   :  { %126 = vmatpush3.msra.mxu0 %v18_v2  ;;  %v15_v5 = vld [vmem:[%s203_s0] sm:$0xff]  ;;  %s108_s25 = sshll.u32 %s161_s24, 4  ;;  %s109_s25 = int_to_ptr.vmem [resolvable:$true] %s108_s25 }
   0x5   :  { %127 = vmatprep.subr.mxu0 %v159_v1  ;;  %v116_v6 = vld [vmem:[%s205_s2] ss:$0 sm:$0xff]  ;;  %s137_s1 = scalar_lea.vmem %s109_s25, 128  ;;  %p142_p1 = scmp.lt.s32.totalorder %s109_s25, %s109_s25 }
   0x6   :  { %128 = vmatpush3.msra.mxu0 %v17_v3  ;;  %p138_p0 = scmp.ne.s32.totalorder %s109_s25, %s137_s1  ;;  %p143_p2 = scmp.lt.s32.totalorder %s137_s1, %s137_s1 }
   0x7   :  { %129 = vmatprep.subr.mxu0 %v159_v1 }
   0x8   :  { %130 = vmatpush3.msra.mxu0 %v16_v4  ;;  %p144_p3 = por %p143_p2, %p142_p1 }
   0x9   :  { %132 = vmatmul.mubr.msk.f32.vlgmr.msra.gmra.mxu0 %vm27_vm1, %v15_v5 }
   0xa   :  { %p145_p4 = pnand %p144_p3, %p138_p0 }
  0xc9   :  { %v97_v7 = vpop.f32.mrf.mxu0 }
  0xca   :  { %v98_v8 = vadd.f32 %v116_v6, %v97_v7 }
  0xcb   :  { %v133_v9 = vpop.f32.mrf.mxu0 }
  0xcc   :  { %101 = vst [vmem:[#allocation2] sm:$0xff] %v98_v8 }
  0xcd   :  { %148 = shalt.err (!%p145_p4)
}
  0xce   :  { %111 = dma.vmem_to_hbm [thread:$0]  %s109_s25, 128, %s206_s3, [#allocation3]  }
  0xcf   :  { %157 = dma.done.wait [#allocation3], 128  }
  0xd0   :  { %158 = vsyncadd [#allocation3], 4294967168 }
  0xd1   :  { %115 = vsyncpa [#allocation3], 1 }

</bundles_post_ra>
